<compile_context>
chip_gen: v6e
topology: v6e:2x2x1
jax: 0.10.0
libtpu: 0.0.40
codegen_flags: <defaults>
</compile_context>

<pallas_src>
import functools

import jax
import jax.numpy as jnp
from jax.experimental import pallas as pl
from jax.experimental.pallas import tpu as pltpu


def _round_up(x, m):
    return (x + m - 1) // m * m


_VMEM_LIMIT = 32 * 1024 * 1024


# --------------------------------------------------------------------------
# GEMM kernels (bias / ReLU / residual epilogue, bf16 in, f32 accumulate)
# --------------------------------------------------------------------------
def _gemm_kernel(a_ref, b_ref, bias_ref, o_ref, acc_ref, *, relu, nk):
    k = pl.program_id(1)

    @pl.when(k == 0)
    def _():
        acc_ref[...] = jnp.zeros_like(acc_ref)

    acc_ref[...] += jnp.dot(a_ref[...], b_ref[...],
                            preferred_element_type=jnp.float32)

    @pl.when(k == nk - 1)
    def _():
        y = acc_ref[...] + bias_ref[...]
        if relu:
            y = jnp.maximum(y, 0.0)
        o_ref[...] = y.astype(o_ref.dtype)


def _gemm_res_kernel(a_ref, b_ref, bias_ref, r_ref, o_ref, acc_ref, *, relu, nk):
    k = pl.program_id(1)

    @pl.when(k == 0)
    def _():
        acc_ref[...] = jnp.zeros_like(acc_ref)

    acc_ref[...] += jnp.dot(a_ref[...], b_ref[...],
                            preferred_element_type=jnp.float32)

    @pl.when(k == nk - 1)
    def _():
        y = acc_ref[...] + bias_ref[...] + r_ref[...].astype(jnp.float32)
        if relu:
            y = jnp.maximum(y, 0.0)
        o_ref[...] = y.astype(o_ref.dtype)


def pallas_matmul(a, b, bias=None, *, relu=False, residual=None,
                  out_dtype=jnp.bfloat16):
    """out = act(a @ b + bias [+ residual]); a:(M,K) b:(K,N)."""
    M, K = a.shape
    K2, N = b.shape
    assert K == K2
    Np = _round_up(N, 128)
    Kp = _round_up(K, 128)
    # Memory-bound 1x1 GEMMs want few, fat grid steps.  Cap the M tile when
    # the output panel is wide so acc + double-buffered panels stay well under
    # the 32 MiB scoped limit (safe for v7x's 64 MiB physical VMEM too).
    if Np <= 256:
        tm_max = 1024
    elif Np <= 1024:
        tm_max = 512
    else:
        tm_max = 256
    tm = tm_max if M >= tm_max else _round_up(max(M, 1), 8)
    Mp = _round_up(M, tm)
    if Kp <= 512:
        tk = Kp
    else:
        tk = max(d for d in range(128, 513, 128) if Kp % d == 0)
    nk = Kp // tk

    a_p = a.astype(jnp.bfloat16)
    if (Mp, Kp) != (M, K):
        a_p = jnp.pad(a_p, ((0, Mp - M), (0, Kp - K)))
    b_p = b.astype(jnp.bfloat16)
    if (Kp, Np) != (K, N):
        b_p = jnp.pad(b_p, ((0, Kp - K), (0, Np - N)))
    if bias is None:
        bias_p = jnp.zeros((1, Np), jnp.float32)
    else:
        bias_p = bias.astype(jnp.float32).reshape(1, N)
        if Np != N:
            bias_p = jnp.pad(bias_p, ((0, 0), (0, Np - N)))

    in_specs = [pl.BlockSpec((tm, tk), lambda i, k: (i, k)),
                pl.BlockSpec((tk, Np), lambda i, k: (k, 0)),
                pl.BlockSpec((1, Np), lambda i, k: (0, 0))]
    args = [a_p, b_p, bias_p]
    if residual is not None:
        r_p = residual.astype(jnp.bfloat16)
        if (Mp, Np) != (M, N):
            r_p = jnp.pad(r_p, ((0, Mp - M), (0, Np - N)))
        in_specs.append(pl.BlockSpec((tm, Np), lambda i, k: (i, 0)))
        args.append(r_p)
        kernel = functools.partial(_gemm_res_kernel, relu=relu, nk=nk)
    else:
        kernel = functools.partial(_gemm_kernel, relu=relu, nk=nk)

    out = pl.pallas_call(
        kernel,
        out_shape=jax.ShapeDtypeStruct((Mp, Np), out_dtype),
        grid=(Mp // tm, nk),
        in_specs=in_specs,
        out_specs=pl.BlockSpec((tm, Np), lambda i, k: (i, 0)),
        scratch_shapes=[pltpu.VMEM((tm, Np), jnp.float32)],
        compiler_params=pltpu.CompilerParams(
            dimension_semantics=("parallel", "arbitrary"),
            vmem_limit_bytes=_VMEM_LIMIT),
    )(*args)
    if (Mp, Np) != (M, N):
        out = out[:M, :N]
    return out


# --------------------------------------------------------------------------
# Fused stride-1 3x3 conv (+folded BN +ReLU): 9-tap accumulation, bf16 in/out,
# f32 accumulation as a value (no scratch RMW), in-kernel column crop.
# --------------------------------------------------------------------------
def _conv3x3_kernel(x_ref, w_ref, b_ref, o_ref, *, wp, lout, h, w, relu):
    def tap(di, dj):
        a = x_ref[0, pl.ds(di * wp + dj, lout), :]
        return jnp.dot(a, w_ref[di * 3 + dj],
                       preferred_element_type=jnp.float32)

    y = tap(0, 0)
    for di in range(3):
        for dj in range(3):
            if di or dj:
                y = y + tap(di, dj)
    y = y + b_ref[...]
    if relu:
        y = jnp.maximum(y, 0.0)
    y = y.astype(o_ref.dtype)
    # Crop the junk columns in-kernel: output row r lives at flattened
    # positions [r*wp, r*wp + w).  wp is a multiple of 8 -> aligned slices.
    for r in range(h):
        o_ref[0, r] = y[r * wp:r * wp + w, :]


def conv3x3_s1(x, wf, bf, relu=True):
    """3x3 / stride 1 / pad 1 conv with pre-folded BN; x is NHWC bf16,
    wf is (9, Cin, Cout) bf16, bf is (1, Cout) f32."""
    N, H, W, Cin = x.shape
    Cout = wf.shape[-1]
    wp = _round_up(W + 2, 8)            # padded row stride (sublane aligned)
    lout = H * wp                       # flattened outputs incl. junk columns
    lin = lout + 3 * wp
    xp = jnp.pad(x, ((0, 0), (1, 1), (1, wp - W - 1), (0, 0)))
    xp = xp.reshape(N, (H + 2) * wp, Cin)
    xp = jnp.pad(xp, ((0, 0), (0, lin - (H + 2) * wp), (0, 0)))

    return pl.pallas_call(
        functools.partial(_conv3x3_kernel, wp=wp, lout=lout, h=H, w=W,
                          relu=relu),
        out_shape=jax.ShapeDtypeStruct((N, H, W, Cout), jnp.bfloat16),
        grid=(N,),
        in_specs=[pl.BlockSpec((1, lin, Cin), lambda n: (n, 0, 0)),
                  pl.BlockSpec((9, Cin, Cout), lambda n: (0, 0, 0)),
                  pl.BlockSpec((1, Cout), lambda n: (0, 0))],
        out_specs=pl.BlockSpec((1, H, W, Cout), lambda n: (n, 0, 0, 0)),
        compiler_params=pltpu.CompilerParams(
            dimension_semantics=("parallel",),
            vmem_limit_bytes=_VMEM_LIMIT),
    )(xp, wf, bf)


# --------------------------------------------------------------------------
# 3x3 / stride-2 maxpool (bf16, 4 parity planes)
# --------------------------------------------------------------------------
def _maxpool_kernel(ee_ref, eo_ref, oe_ref, oo_ref, o_ref, *, oh, ow):
    def s(r, i, j):
        return r[0, pl.ds(i, oh), pl.ds(j, ow), :]

    m = jnp.maximum(s(ee_ref, 0, 0), s(ee_ref, 0, 1))
    m = jnp.maximum(m, s(ee_ref, 1, 0))
    m = jnp.maximum(m, s(ee_ref, 1, 1))
    m = jnp.maximum(m, s(eo_ref, 0, 0))
    m = jnp.maximum(m, s(eo_ref, 1, 0))
    m = jnp.maximum(m, s(oe_ref, 0, 0))
    m = jnp.maximum(m, s(oe_ref, 0, 1))
    m = jnp.maximum(m, s(oo_ref, 0, 0))
    o_ref[0] = m.astype(o_ref.dtype)


def maxpool_3x3_s2(x):
    N, H, W, C = x.shape
    OH = (H - 1) // 2 + 1
    OW = (W - 1) // 2 + 1
    Hp, Wp = 2 * OH + 2, 2 * OW + 2
    neg = float(jnp.finfo(jnp.bfloat16).min)
    xp = jnp.pad(x.astype(jnp.bfloat16),
                 ((0, 0), (1, Hp - H - 1), (1, Wp - W - 1), (0, 0)),
                 constant_values=neg)
    # TODO(synk): parity decomposition could move in-kernel (stride-2 pl.ds)
    # to avoid these four host-side strided copies.
    ee = xp[:, 0::2, 0::2, :]
    eo = xp[:, 0::2, 1::2, :]
    oe = xp[:, 1::2, 0::2, :]
    oo = xp[:, 1::2, 1::2, :]
    spec_in = pl.BlockSpec((1, OH + 1, OW + 1, C), lambda n: (n, 0, 0, 0))
    return pl.pallas_call(
        functools.partial(_maxpool_kernel, oh=OH, ow=OW),
        out_shape=jax.ShapeDtypeStruct((N, OH, OW, C), jnp.bfloat16),
        grid=(N,),
        in_specs=[spec_in, spec_in, spec_in, spec_in],
        out_specs=pl.BlockSpec((1, OH, OW, C), lambda n: (n, 0, 0, 0)),
        compiler_params=pltpu.CompilerParams(
            dimension_semantics=("parallel",)),
    )(ee, eo, oe, oo)


# --------------------------------------------------------------------------
# HMA attention kernels
# --------------------------------------------------------------------------
def _chan_att_kernel(x_ref, w1_ref, b1_ref, w2_ref, b2_ref,
                     o_ref, mean_ref, max_ref):
    # TODO(synk): HMAttention source was not provided; implemented CBAM-style
    # (channel MLP gate + spatial mean/max stats), b2 added once to the summed
    # branches.
    x = x_ref[0].astype(jnp.float32)                         # (HW, C)
    avg = jnp.mean(x, axis=0, keepdims=True)                 # (1, C)
    mx = jnp.max(x, axis=0, keepdims=True)
    w1 = w1_ref[...]
    w2 = w2_ref[...]
    h1 = jnp.maximum(jnp.dot(avg.astype(jnp.bfloat16), w1,
                             preferred_element_type=jnp.float32)
                     + b1_ref[...], 0.0)
    h2 = jnp.maximum(jnp.dot(mx.astype(jnp.bfloat16), w1,
                             preferred_element_type=jnp.float32)
                     + b1_ref[...], 0.0)
    z = (jnp.dot(h1.astype(jnp.bfloat16), w2, preferred_element_type=jnp.float32)
         + jnp.dot(h2.astype(jnp.bfloat16), w2, preferred_element_type=jnp.float32)
         + b2_ref[...])
    att = jax.nn.sigmoid(z)                                  # (1, C)
    xg = x * att
    o_ref[0] = xg.astype(o_ref.dtype)
    # Spatial-attention statistics fused here (x is already resident in VMEM).
    mean_ref[0] = jnp.mean(xg, axis=-1, keepdims=True)
    max_ref[0] = jnp.max(xg, axis=-1, keepdims=True)


def pallas_channel_attention(x3, w1, b1, w2, b2):
    N, HW, C = x3.shape
    Hh = w1.shape[1]
    return pl.pallas_call(
        _chan_att_kernel,
        out_shape=(jax.ShapeDtypeStruct((N, HW, C), jnp.bfloat16),
                   jax.ShapeDtypeStruct((N, HW, 1), jnp.float32),
                   jax.ShapeDtypeStruct((N, HW, 1), jnp.float32)),
        grid=(N,),
        in_specs=[pl.BlockSpec((1, HW, C), lambda n: (n, 0, 0)),
                  pl.BlockSpec((C, Hh), lambda n: (0, 0)),
                  pl.BlockSpec((1, Hh), lambda n: (0, 0)),
                  pl.BlockSpec((Hh, C), lambda n: (0, 0)),
                  pl.BlockSpec((1, C), lambda n: (0, 0))],
        out_specs=(pl.BlockSpec((1, HW, C), lambda n: (n, 0, 0)),
                   pl.BlockSpec((1, HW, 1), lambda n: (n, 0, 0)),
                   pl.BlockSpec((1, HW, 1), lambda n: (n, 0, 0))),
        compiler_params=pltpu.CompilerParams(
            dimension_semantics=("parallel",)),
    )(x3, w1, b1, w2, b2)


def _spatial_gate_kernel(x_ref, g_ref, o_ref):
    x = x_ref[0].astype(jnp.float32)                         # (HW, C)
    g = jax.nn.sigmoid(g_ref[0])                             # (HW, 1)
    o_ref[0] = (x * g).astype(o_ref.dtype)


def pallas_spatial_gate(x3, gate):
    N, HW, C = x3.shape
    return pl.pallas_call(
        _spatial_gate_kernel,
        out_shape=jax.ShapeDtypeStruct((N, HW, C), jnp.bfloat16),
        grid=(N,),
        in_specs=[pl.BlockSpec((1, HW, C), lambda n: (n, 0, 0)),
                  pl.BlockSpec((1, HW, 1), lambda n: (n, 0, 0))],
        out_specs=pl.BlockSpec((1, HW, C), lambda n: (n, 0, 0)),
        compiler_params=pltpu.CompilerParams(
            dimension_semantics=("parallel",)),
    )(x3, gate.astype(jnp.float32))


def _gap_kernel(x_ref, o_ref):
    o_ref[...] = jnp.mean(x_ref[0].astype(jnp.float32), axis=0, keepdims=True)


def pallas_global_avg_pool(x3):
    N, HW, C = x3.shape
    return pl.pallas_call(
        _gap_kernel,
        out_shape=jax.ShapeDtypeStruct((N, C), jnp.float32),
        grid=(N,),
        in_specs=[pl.BlockSpec((1, HW, C), lambda n: (n, 0, 0))],
        out_specs=pl.BlockSpec((1, C), lambda n: (n, 0)),
        compiler_params=pltpu.CompilerParams(
            dimension_semantics=("parallel",)),
    )(x3)


# --------------------------------------------------------------------------
# Conv wrappers (weights are pre-folded / pre-reshaped / bf16)
# --------------------------------------------------------------------------
def conv1x1(x, w2d, bias, *, stride=1, relu=False, residual=None,
            out_dtype=jnp.bfloat16):
    N, H, W, Cin = x.shape
    Cout = w2d.shape[-1]
    if stride > 1:
        x = x[:, ::stride, ::stride, :]
    _, OH, OW, _ = x.shape
    a = x.reshape(N * OH * OW, Cin)
    r2 = residual.reshape(N * OH * OW, Cout) if residual is not None else None
    out = pallas_matmul(a, w2d, bias, relu=relu, residual=r2,
                        out_dtype=out_dtype)
    return out.reshape(N, OH, OW, Cout)


def conv_im2col(x, wflat, bias, *, kh, kw, stride=1, pad=0, relu=False,
                out_dtype=jnp.bfloat16):
    """General conv via bf16 im2col GEMM (conv1 7x7/s2, the two 3x3/s2 convs,
    layer4's 1x1 conv2, spatial-attention conv)."""
    N, H, W, Cin = x.shape
    Cout = wflat.shape[-1]
    OH = (H + 2 * pad - kh) // stride + 1
    OW = (W + 2 * pad - kw) // stride + 1
    xb = x.astype(jnp.bfloat16)
    if kh == 1 and kw == 1 and pad == 0:
        xs = xb[:, ::stride, ::stride, :] if stride > 1 else xb
        a = xs.reshape(N * OH * OW, Cin)
    else:
        # TODO(synk): the two stride-2 3x3 convs could use a fused parity-plane
        # kernel instead of im2col (9x less HBM traffic).
        xp = jnp.pad(xb, ((0, 0), (pad, pad), (pad, pad), (0, 0)))
        cols = [xp[:, di:di + stride * OH:stride, dj:dj + stride * OW:stride, :]
                for di in range(kh) for dj in range(kw)]
        a = jnp.stack(cols, axis=3).reshape(N * OH * OW, kh * kw * Cin)
    out = pallas_matmul(a, wflat, bias, relu=relu, out_dtype=out_dtype)
    return out.reshape(N, OH, OW, Cout)


def hm_attention(x, p):
    N, H, W, C = x.shape
    x3 = x.reshape(N, H * W, C).astype(jnp.bfloat16)
    x3, c_mean, c_max = pallas_channel_attention(
        x3, p['cw1'], p['cb1'], p['cw2'], p['cb2'])
    s = jnp.concatenate([c_mean, c_max], axis=-1).reshape(N, H, W, 2)
    k = p['k']
    satt = conv_im2col(s, p['sw'], p['sb'], kh=k, kw=k, stride=1, pad=k // 2,
                       relu=False, out_dtype=jnp.float32)        # (N,H,W,1)
    x3 = pallas_spatial_gate(x3, satt.reshape(N, H * W, 1))
    return x3.reshape(N, H, W, C)


def bottleneck(x, p):
    out = conv1x1(x, p['w1'], p['b1'], relu=True)                # bf16 mid
    if p['fused']:
        out = conv3x3_s1(out, p['w2'], p['b2'], relu=True)
    else:
        out = conv_im2col(out, p['w2'], p['b2'], kh=p['k2'], kw=p['k2'],
                          stride=p['s2'], pad=p['p2'], relu=True)
    if 'dw' in p:
        idn = conv1x1(x, p['dw'], p['db'], stride=p['ds'], relu=False)
    else:
        idn = x
    # conv3 with residual add + ReLU fused into the GEMM epilogue.
    return conv1x1(out, p['w3'], p['b3'], relu=True, residual=idn)


# --------------------------------------------------------------------------
# Deterministic synthetic parameters (shapes from ResNet50Localizer.__init__)
# --------------------------------------------------------------------------
class ParamGen:
    def __init__(self, seed=0):
        self._key = jax.random.PRNGKey(seed)

    def normal(self, shape):
        self._key, sub = jax.random.split(self._key)
        return jax.random.normal(sub, shape, dtype=jnp.float32)


def make_bn_params(pg, C):
    gamma = 1.0 + 0.05 * pg.normal((C,))
    beta = 0.05 * pg.normal((C,))
    mean = 0.05 * pg.normal((C,))
    var = 1.0 + 0.05 * jnp.abs(pg.normal((C,)))
    scale = gamma * jax.lax.rsqrt(var + 1e-5)
    return {'scale': scale, 'shift': beta - mean * scale}


def make_conv_w(pg, kh, kw, cin, cout):
    fan_in = kh * kw * cin
    return pg.normal((kh, kw, cin, cout)) * (2.0 / fan_in) ** 0.5


def make_bottleneck_params(pg, cin, cmid, cout, stride, conv2_k=3,
                           conv2_bias=False, downsample=False,
                           down_stride=1, down_bias=False):
    p = {
        'w1': make_conv_w(pg, 1, 1, cin, cmid), 'bn1': make_bn_params(pg, cmid),
        'w2': make_conv_w(pg, conv2_k, conv2_k, cmid, cmid),
        'bn2': make_bn_params(pg, cmid),
        's2': stride, 'p2': conv2_k // 2,
        'w3': make_conv_w(pg, 1, 1, cmid, cout), 'bn3': make_bn_params(pg, cout),
    }
    if conv2_bias:
        p['b2'] = jnp.zeros((cmid,), jnp.float32)
    if downsample:
        p['dw'] = make_conv_w(pg, 1, 1, cin, cout)
        p['dbn'] = make_bn_params(pg, cout)
        p['ds'] = down_stride
        if down_bias:
            p['db'] = jnp.zeros((cout,), jnp.float32)
    return p


def make_layer_params(pg, cin, cmid, cout, blocks, stride):
    params = [make_bottleneck_params(pg, cin, cmid, cout, stride,
                                     downsample=True, down_stride=stride)]
    for _ in range(blocks - 1):
        params.append(make_bottleneck_params(pg, cout, cmid, cout, 1))
    return params


def make_layer4_params(pg):
    # layer4[0].conv2 replaced with 1x1/stride1 (bias) and downsample[0]
    # replaced with 1x1/stride1 (bias) -> no spatial downsampling in layer4.
    blk0 = make_bottleneck_params(pg, 1024, 512, 2048, stride=1, conv2_k=1,
                                  conv2_bias=True, downsample=True,
                                  down_stride=1, down_bias=True)
    return [blk0,
            make_bottleneck_params(pg, 2048, 512, 2048, 1),
            make_bottleneck_params(pg, 2048, 512, 2048, 1)]


def make_hma_params(pg, C, k, r=16):
    hidden = max(C // r, 1)
    hp = 128  # pad the MLP hidden dim to a full lane width

    def xavier(shape, fan_in, fan_out):
        return pg.normal(shape) * (2.0 / (fan_in + fan_out)) ** 0.5

    cw1 = xavier((C, hidden), C, hidden)
    cw2 = xavier((hidden, C), hidden, C)
    return {
        'k': k,
        'cw1p': jnp.pad(cw1, ((0, 0), (0, hp - hidden))),
        'cb1p': jnp.zeros((hp,), jnp.float32),
        'cw2p': jnp.pad(cw2, ((0, hp - hidden), (0, 0))),
        'cb2': jnp.zeros((C,), jnp.float32),
        'sw': xavier((k, k, 2, 1), k * k * 2, k * k),
        'sb': jnp.zeros((1,), jnp.float32),
    }


def make_model_params(cls_num=200, seed=0):
    pg = ParamGen(seed)
    return {
        'conv1_w': make_conv_w(pg, 7, 7, 3, 64),
        'bn1': make_bn_params(pg, 64),
        'csatt56': make_hma_params(pg, 64, 7),
        'layer1': make_layer_params(pg, 64, 64, 256, 3, 1),
        'layer2': make_layer_params(pg, 256, 128, 512, 4, 2),
        'csatt28': make_hma_params(pg, 512, 5),
        'layer3': make_layer_params(pg, 512, 256, 1024, 6, 2),
        'csatt14': make_hma_params(pg, 1024, 3),
        'layer4': make_layer4_params(pg),
        'fc_w': make_conv_w(pg, 1, 1, 2048, cls_num),
        'fc_b': jnp.zeros((cls_num,), jnp.float32),
    }


# --------------------------------------------------------------------------
# One-time parameter preparation: fold BN, reshape to GEMM layouts, cast bf16
# --------------------------------------------------------------------------
def _fold2d(w2d, bn, bias=None):
    """w2d: (K, Cout). Returns (w bf16, bias f32) with BN folded in."""
    w2d = w2d.astype(jnp.float32)
    cout = w2d.shape[-1]
    b = (jnp.zeros((cout,), jnp.float32) if bias is None
         else bias.astype(jnp.float32))
    if bn is None:
        return w2d.astype(jnp.bfloat16), b
    scale = bn['scale'].astype(jnp.float32)
    shift = bn['shift'].astype(jnp.float32)
    return (w2d * scale[None, :]).astype(jnp.bfloat16), shift + b * scale


def prepare_bottleneck(p):
    cin, cmid = p['w1'].shape[2], p['w1'].shape[3]
    cout = p['w3'].shape[3]
    k2 = p['w2'].shape[0]
    fused = (k2 == 3 and p['s2'] == 1)
    q = {'fused': fused, 'k2': k2, 's2': p['s2'], 'p2': p['p2']}
    q['w1'], q['b1'] = _fold2d(p['w1'].reshape(cin, cmid), p['bn1'])
    if fused:
        wf, bf = _fold2d(p['w2'].reshape(9 * cmid, cmid), p['bn2'], p.get('b2'))
        q['w2'] = wf.reshape(9, cmid, cmid)
        q['b2'] = bf.reshape(1, cmid)
    else:
        q['w2'], q['b2'] = _fold2d(p['w2'].reshape(k2 * k2 * cmid, cmid),
                                   p['bn2'], p.get('b2'))
    q['w3'], q['b3'] = _fold2d(p['w3'].reshape(cmid, cout), p['bn3'])
    if 'dw' in p:
        q['dw'], q['db'] = _fold2d(p['dw'].reshape(cin, cout), p['dbn'],
                                   p.get('db'))
        q['ds'] = p['ds']
    return q


def prepare_model_params(p):
    q = {}
    q['conv1_w'], q['conv1_b'] = _fold2d(p['conv1_w'].reshape(7 * 7 * 3, 64),
                                         p['bn1'])
    for name in ('csatt56', 'csatt28', 'csatt14'):
        hp = p[name]
        k = hp['k']
        q[name] = {
            'k': k,
            'cw1': hp['cw1p'].astype(jnp.bfloat16),
            'cb1': hp['cb1p'].reshape(1, -1).astype(jnp.float32),
            'cw2': hp['cw2p'].astype(jnp.bfloat16),
            'cb2': hp['cb2'].reshape(1, -1).astype(jnp.float32),
            'sw': hp['sw'].reshape(k * k * 2, 1).astype(jnp.bfloat16),
            'sb': hp['sb'].astype(jnp.float32),
        }
    for name in ('layer1', 'layer2', 'layer3', 'layer4'):
        q[name] = [prepare_bottleneck(bp) for bp in p[name]]
    cls = p['fc_w'].shape[-1]
    q['fc_w'], q['fc_b'] = _fold2d(p['fc_w'].reshape(2048, cls), None,
                                   p['fc_b'])
    return q


# --------------------------------------------------------------------------
# Forward pass (mirrors ResNet50Localizer.forward)
# --------------------------------------------------------------------------
def resnet50_localizer_forward(params, x_nchw):
    x = jnp.transpose(x_nchw, (0, 2, 3, 1))                       # -> NHWC
    # conv1 + bn1 + relu fused into one GEMM; bf16 out feeds the bf16 maxpool.
    x = conv_im2col(x, params['conv1_w'], params['conv1_b'], kh=7, kw=7,
                    stride=2, pad=3, relu=True)
    x = maxpool_3x3_s2(x)                                         # bf16 out
    x = hm_attention(x, params['csatt56'])
    for bp in params['layer1']:
        x = bottleneck(x, bp)
    for bp in params['layer2']:
        x = bottleneck(x, bp)
    x = hm_attention(x, params['csatt28'])
    for bp in params['layer3']:
        x = bottleneck(x, bp)
    x = hm_attention(x, params['csatt14'])
    for bp in params['layer4']:
        x = bottleneck(x, bp)
    crms = conv1x1(x, params['fc_w'], params['fc_b'], relu=False,
                   out_dtype=jnp.float32)                         # 1x1 "fc"
    N, H, W, C = crms.shape
    pred = pallas_global_avg_pool(crms.reshape(N, H * W, C))      # (N, cls)
    crms_nchw = jnp.transpose(crms, (0, 3, 1, 2))                 # back to NCHW
    return pred, crms_nchw


if __name__ == "__main__":
    CLS_NUM = 200
    key = jax.random.PRNGKey(0)
    # Small input consistent with the module: NCHW, 3-channel image.
    x = jax.random.normal(key, (2, 3, 32, 32), dtype=jnp.float32)
    raw_params = make_model_params(cls_num=CLS_NUM, seed=0)
    params = prepare_model_params(raw_params)                     # one-time prep
    jax.block_until_ready(jax.tree_util.tree_leaves(params))
    pred, crms = resnet50_localizer_forward(params, x)
    jax.block_until_ready((pred, crms))
    assert pred.shape == (2, CLS_NUM), pred.shape
    assert crms.shape == (2, CLS_NUM, 2, 2), crms.shape
    assert bool(jnp.isfinite(pred).all()) and bool(jnp.isfinite(crms).all())
    print("KERNEL_OK")
</pallas_src>

<mosaic_0001>
module attributes {stable_mosaic.version = 11 : i64} {
  func.func @_gemm_kernel(%arg0: i32, %arg1: i32, %arg2: memref<512x256xbf16, #tpu.memory_space<vmem>>, %arg3: memref<256x128xbf16, #tpu.memory_space<vmem>>, %arg4: memref<1x128xf32, #tpu.memory_space<vmem>>, %arg5: memref<512x128xbf16, #tpu.memory_space<vmem>>, %arg6: memref<512x128xf32, #tpu.memory_space<vmem>>) attributes {dimension_semantics = [#tpu.dimension_semantics<parallel>, #tpu.dimension_semantics<arbitrary>], iteration_bounds = array<i64: 1, 1>, scalar_prefetch = 0 : i64, scratch_operands = 1 : i64, tpu.core_type = #tpu.core_type<tc>, window_params = [{transform_indices = @transform_0, window_bounds = array<i64: 512, 256>}, {transform_indices = @transform_1, window_bounds = array<i64: 256, 128>}, {pipeline_mode = #tpu.pipeline_mode<synchronous>, transform_indices = @transform_2, window_bounds = array<i64: 1, 128>}, {transform_indices = @transform_3, window_bounds = array<i64: 512, 128>}]} {
    %c0_i32 = arith.constant 0 : i32
    %0 = arith.cmpi eq, %arg1, %c0_i32 : i32
    %1 = arith.extui %0 : i1 to i32
    %c0_i32_0 = arith.constant 0 : i32
    %2 = arith.cmpi ne, %1, %c0_i32_0 : i32
    scf.if %2 {
      %cst_10 = arith.constant 0.000000e+00 : f32
      %12 = vector.broadcast %cst_10 : f32 to vector<512x128xf32>
      %c0_11 = arith.constant 0 : index
      %c0_12 = arith.constant 0 : index
      %13 = vector.load %arg6[%c0_11, %c0_12] : memref<512x128xf32, #tpu.memory_space<vmem>>, vector<512x128xf32>
      tpu.vector_store %arg6[%c0_11, %c0_12], %12 {strides = array<i32>} : memref<512x128xf32, #tpu.memory_space<vmem>>, vector<512x128xf32>,
    } else {
    }
    %c0 = arith.constant 0 : index
    %c0_1 = arith.constant 0 : index
    %3 = vector.load %arg6[%c0, %c0_1] : memref<512x128xf32, #tpu.memory_space<vmem>>, vector<512x128xf32>
    %c0_2 = arith.constant 0 : index
    %c0_3 = arith.constant 0 : index
    %4 = vector.load %arg2[%c0_2, %c0_3] : memref<512x256xbf16, #tpu.memory_space<vmem>>, vector<512x256xbf16>
    %c0_4 = arith.constant 0 : index
    %c0_5 = arith.constant 0 : index
    %5 = vector.load %arg3[%c0_4, %c0_5] : memref<256x128xbf16, #tpu.memory_space<vmem>>, vector<256x128xbf16>
    %cst = arith.constant dense<0.000000e+00> : vector<512x128xf32>
    %6 = tpu.matmul %4, %5, %cst {dimension_numbers = #tpu.dot_dimension_numbers<[1], [0], [0], [1], [0, 0, 1, 1], [], []>} : vector<512x256xbf16>, vector<256x128xbf16>, vector<512x128xf32> -> vector<512x128xf32>
    %7 = arith.addf %3, %6 : vector<512x128xf32>
    %c0_6 = arith.constant 0 : index
    %c0_7 = arith.constant 0 : index
    %8 = vector.load %arg6[%c0_6, %c0_7] : memref<512x128xf32, #tpu.memory_space<vmem>>, vector<512x128xf32>
    tpu.vector_store %arg6[%c0_6, %c0_7], %7 {strides = array<i32>} : memref<512x128xf32, #tpu.memory_space<vmem>>, vector<512x128xf32>,
    %c0_i32_8 = arith.constant 0 : i32
    %9 = arith.cmpi eq, %arg1, %c0_i32_8 : i32
    %10 = arith.extui %9 : i1 to i32
    %c0_i32_9 = arith.constant 0 : i32
    %11 = arith.cmpi ne, %10, %c0_i32_9 : i32
    scf.if %11 {
      %c0_10 = arith.constant 0 : index
      %c0_11 = arith.constant 0 : index
      %12 = vector.load %arg6[%c0_10, %c0_11] : memref<512x128xf32, #tpu.memory_space<vmem>>, vector<512x128xf32>
      %c0_12 = arith.constant 0 : index
      %c0_13 = arith.constant 0 : index
      %13 = vector.load %arg4[%c0_12, %c0_13] : memref<1x128xf32, #tpu.memory_space<vmem>>, vector<1x128xf32>
      %14 = vector.broadcast %13 : vector<1x128xf32> to vector<512x128xf32>
      %15 = arith.addf %12, %14 : vector<512x128xf32>
      %cst_14 = arith.constant 0.000000e+00 : f32
      %16 = vector.broadcast %cst_14 : f32 to vector<512x128xf32>
      %17 = arith.maximumf %15, %16 : vector<512x128xf32>
      %18 = arith.truncf %17 : vector<512x128xf32> to vector<512x128xbf16>
      %c0_15 = arith.constant 0 : index
      %c0_16 = arith.constant 0 : index
      %19 = vector.load %arg5[%c0_15, %c0_16] : memref<512x128xbf16, #tpu.memory_space<vmem>>, vector<512x128xbf16>
      tpu.vector_store %arg5[%c0_15, %c0_16], %18 {strides = array<i32>} : memref<512x128xbf16, #tpu.memory_space<vmem>>, vector<512x128xbf16>,
    } else {
    }
    return
  }
  func.func @transform_0(%arg0: i32, %arg1: i32) -> (i32, i32) {
    %c0_i32 = arith.constant 0 : i32
    return %arg0, %arg1 : i32, i32
  }
  func.func @transform_1(%arg0: i32, %arg1: i32) -> (i32, i32) {
    %c0_i32 = arith.constant 0 : i32
    %c0_i32_0 = arith.constant 0 : i32
    return %arg1, %c0_i32 : i32, i32
  }
  func.func @transform_2(%arg0: i32, %arg1: i32) -> (i32, i32) {
    %c0_i32 = arith.constant 0 : i32
    %c0_i32_0 = arith.constant 0 : i32
    %c0_i32_1 = arith.constant 0 : i32
    return %c0_i32, %c0_i32_0 : i32, i32
  }
  func.func @transform_3(%arg0: i32, %arg1: i32) -> (i32, i32) {
    %c0_i32 = arith.constant 0 : i32
    %c0_i32_0 = arith.constant 0 : i32
    return %arg0, %c0_i32 : i32, i32
  }
}

</mosaic_0001>

<bundles_post_ra>
// kernel: tpu_custom_call.1
= control target key start
LH: loop header
LB: loop body
LE: loop exit
PB: predicated region body
PF: predicated region fallthrough
CT: control target
= control target key end

     0   :  { %8 = vsyncpa [#allocation4], 0  ;;  %s2407_s0 = inlined_call_operand.hbm [shape: bf16[512,256], index: 0, kind: input, shape index: {}]   ;;  %s2408_s1 = inlined_call_operand.hbm [shape: bf16[256,128], index: 1, kind: input, shape index: {}]   ;;  %s2409_s2 = inlined_call_operand.vmem [shape: f32[1,128], index: 2, kind: input, shape index: {}]   ;;  %s2410_s3 = inlined_call_operand.hbm [shape: bf16[512,128], index: 3, kind: output, shape index: {}]  }
   0x1   :  { %9 = vsyncpa [#allocation7], 0 }
   0x2   :  { %10 = vsyncpa [#allocation5], 0  ;;  %s2263_s12 = smov [#allocation3]  }
   0x3   :  { %s16_s13 = sshll.u32 %s2263_s12, 4  ;;  %s17_s13 = int_to_ptr.vmem [resolvable:$true] %s16_s13 }
   0x4   :  { %s2205_s14 = scalar_lea.vmem %s17_s13, 8192  ;;  %p2210_p1 = scmp.lt.s32.totalorder %s17_s13, %s17_s13 }
   0x5   :  { %p2206_p0 = scmp.ne.s32.totalorder %s17_s13, %s2205_s14  ;;  %p2211_p2 = scmp.lt.s32.totalorder %s2205_s14, %s2205_s14 }
   0x7   :  { %p2212_p3 = por %p2211_p2, %p2210_p1 }
   0x9   :  { %p2213_p4 = pnand %p2212_p3, %p2206_p0 }
   0xb   :  { %2216 = shalt.err (!%p2213_p4)
}
   0xc   :  { %s2264_s15 = smov 128   ;;  %s2265_s16 = smov 8  }
   0xd   :  { %22 = dma.hbm_to_vmem [thread:$0]  %s2407_s0, 8192, %s17_s13, [#allocation4], %s2264_s15, %s2264_s15, %s2265_s16  }
   0xe   :  { %s2266_s19 = smov [#allocation6]  }
   0xf   :  { %s28_s20 = sshll.u32 %s2266_s19, 4  ;;  %s29_s20 = int_to_ptr.vmem [resolvable:$true] %s28_s20 }
  0x10   :  { %s2225_s21 = scalar_lea.vmem %s29_s20, 2048  ;;  %p2230_p6 = scmp.lt.s32.totalorder %s29_s20, %s29_s20 }
  0x11   :  { %p2226_p5 = scmp.ne.s32.totalorder %s29_s20, %s2225_s21  ;;  %p2231_p7 = scmp.lt.s32.totalorder %s2225_s21, %s2225_s21 }
  0x13   :  { %p2232_p8 = por %p2231_p7, %p2230_p6 }
  0x15   :  { %p2233_p9 = pnand %p2232_p8, %p2226_p5 }
  0x17   :  { %2236 = shalt.err (!%p2233_p9)
}
  0x18   :  { %s2267_s22 = smov 64   ;;  %s2268_s23 = smov 4  }
  0x19   :  { %34 = dma.hbm_to_vmem [thread:$0]  %s2408_s1, 2048, %s29_s20, [#allocation7], %s2267_s22, %s2267_s22, %s2268_s23  }
  0x1a   :  { %2257 = dma.done.wait [#allocation4], 8192  }
  0x1b   :  { %2258 = vsyncadd [#allocation4], 4294959104 }
  0x1c   :  { %2259 = dma.done.wait [#allocation7], 2048  }
  0x1d   :  { %2260 = vsyncadd [#allocation7], 4294965248  ;;  %v2269_v0 = vmov 0   ;;  %v2085_v1 = vld [vmem:[#allocation6 + $0x38] sm:$0xff]   ;;  %v2086_v2 = vld [vmem:[#allocation6 + $0x30] sm:$0xff]  }
  0x1e   :  { %688 = vmatprep.subr.bf16.mxu0 %v2269_v0  ;;  %2045 = vmatprep.subr.bf16.mxu1 %v2269_v0  ;;  %v2087_v3 = vld [vmem:[#allocation6 + $0x28] sm:$0xff]   ;;  %v2088_v4 = vld [vmem:[#allocation6 + $0x20] sm:$0xff]   ;;  %v2089_v5 = vld [vmem:[#allocation6 + $0x18] sm:$0xff]  }
  0x1f   :  { %689 = vmatpush1.bf16.msra.mxu0 %v2085_v1  ;;  %2061 = vmatpush1.bf16.msra.mxu1 %v2085_v1  ;;  %v2103_v6 = vld [vmem:[#allocation3 + $0x4] ss:$8 sps:$4 sm:$0xff]   ;;  %v2090_v7 = vld [vmem:[#allocation6 + $0x10] sm:$0xff]   ;;  %v2093_v11 = vld [vmem:[#allocation6 + $0x78] sm:$0xff]  }
  0x20   :  { %690 = vmatprep.subr.bf16.mxu0 %v2269_v0  ;;  %2046 = vmatprep.subr.bf16.mxu1 %v2269_v0  ;;  %v2106_v8 = vld [vmem:[#allocation3 + $0x104] ss:$8 sps:$4 sm:$0xff]   ;;  %v2094_v12 = vld [vmem:[#allocation6 + $0x70] sm:$0xff]   ;;  %v2097_v15 = vld [vmem:[#allocation6 + $0x58] sm:$0xff]  }
  0x21   :  { %720 = vmatprep.mubr.bf16.mxu0 %v2103_v6  ;;  %848 = vmatprep.mubr.bf16.mxu1 %v2106_v8  ;;  %v2091_v9 = vld [vmem:[#allocation6 + $0x8] sm:$0xff]   ;;  %v2092_v10 = vld [vmem:[#allocation6] sm:$0xff]   ;;  %v2098_v16 = vld [vmem:[#allocation6 + $0x50] sm:$0xff]  }
  0x22   :  { %v2095_v13 = vld [vmem:[#allocation6 + $0x68] sm:$0xff]   ;;  %v2096_v14 = vld [vmem:[#allocation6 + $0x60] sm:$0xff]   ;;  %v2107_v21 = vld [vmem:[#allocation3 + $0x14] ss:$8 sps:$4 sm:$0xff]  }
  0x23   :  { %691 = vmatpush1.bf16.msra.mxu0 %v2086_v2  ;;  %2062 = vmatpush1.bf16.msra.mxu1 %v2086_v2  ;;  %v2099_v17 = vld [vmem:[#allocation6 + $0x48] sm:$0xff]   ;;  %v2100_v18 = vld [vmem:[#allocation6 + $0x40] sm:$0xff]   ;;  %v2109_v22 = vld [vmem:[#allocation3 + $0x114] ss:$8 sps:$4 sm:$0xff]  }
  0x24   :  { %692 = vmatprep.subr.bf16.mxu0 %v2269_v0  ;;  %2047 = vmatprep.subr.bf16.mxu1 %v2269_v0  ;;  %v2101_v19 = vld [vmem:[#allocation3] ss:$8 sps:$4 sm:$0xff]   ;;  %v2111_v23 = vld [vmem:[#allocation3 + $0x10] ss:$8 sps:$4 sm:$0xff]   ;;  %v2113_v25 = vld [vmem:[#allocation3 + $0x24] ss:$8 sps:$4 sm:$0xff]  }
  0x25   :  { %v2104_v20 = vld [vmem:[#allocation3 + $0x100] ss:$8 sps:$4 sm:$0xff]   ;;  %v2112_v24 = vld [vmem:[#allocation3 + $0x110] ss:$8 sps:$4 sm:$0xff]   ;;  %v2115_v26 = vld [vmem:[#allocation3 + $0x124] ss:$8 sps:$4 sm:$0xff]  }
  0x26   :  { %v2117_v27 = vld [vmem:[#allocation3 + $0x20] ss:$8 sps:$4 sm:$0xff]   ;;  %v2119_v29 = vld [vmem:[#allocation3 + $0x34] ss:$8 sps:$4 sm:$0xff]   ;;  %v2123_v31 = vld [vmem:[#allocation3 + $0x30] ss:$8 sps:$4 sm:$0xff]  }
  0x27   :  { %693 = vmatpush1.bf16.msra.mxu0 %v2087_v3  ;;  %2063 = vmatpush1.bf16.msra.mxu1 %v2087_v3  ;;  %v2118_v28 = vld [vmem:[#allocation3 + $0x120] ss:$8 sps:$4 sm:$0xff]   ;;  %v2121_v30 = vld [vmem:[#allocation3 + $0x134] ss:$8 sps:$4 sm:$0xff]   ;;  %v2124_v32 = vld [vmem:[#allocation3 + $0x130] ss:$8 sps:$4 sm:$0xff]  }
  0x28   :  { %694 = vmatprep.subr.bf16.mxu0 %v2269_v0  ;;  %2048 = vmatprep.subr.bf16.mxu1 %v2269_v0  ;;  %v2125_v33 = vld [vmem:[#allocation3 + $0x44] ss:$8 sps:$4 sm:$0xff]   ;;  %v2129_v35 = vld [vmem:[#allocation3 + $0x40] ss:$8 sps:$4 sm:$0xff]   ;;  %v2131_v37 = vld [vmem:[#allocation3 + $0x54] ss:$8 sps:$4 sm:$0xff]  }
  0x29   :  { %v2127_v34 = vld [vmem:[#allocation3 + $0x144] ss:$8 sps:$4 sm:$0xff]   ;;  %v2130_v36 = vld [vmem:[#allocation3 + $0x140] ss:$8 sps:$4 sm:$0xff]   ;;  %v2133_v38 = vld [vmem:[#allocation3 + $0x154] ss:$8 sps:$4 sm:$0xff]  }
  0x2a   :  { %v2135_v39 = vld [vmem:[#allocation3 + $0x50] ss:$8 sps:$4 sm:$0xff]   ;;  %v2137_v41 = vld [vmem:[#allocation3 + $0x64] ss:$8 sps:$4 sm:$0xff]   ;;  %v2141_v43 = vld [vmem:[#allocation3 + $0x60] ss:$8 sps:$4 sm:$0xff]  }
  0x2b   :  { %695 = vmatpush1.bf16.msra.mxu0 %v2088_v4  ;;  %2064 = vmatpush1.bf16.msra.mxu1 %v2088_v4  ;;  %v2136_v40 = vld [vmem:[#allocation3 + $0x150] ss:$8 sps:$4 sm:$0xff]   ;;  %v2139_v42 = vld [vmem:[#allocation3 + $0x164] ss:$8 sps:$4 sm:$0xff]   ;;  %v2142_v44 = vld [vmem:[#allocation3 + $0x160] ss:$8 sps:$4 sm:$0xff]  }
  0x2c   :  { %696 = vmatprep.subr.bf16.mxu0 %v2269_v0  ;;  %2049 = vmatprep.subr.bf16.mxu1 %v2269_v0  ;;  %v2143_v45 = vld [vmem:[#allocation3 + $0x74] ss:$8 sps:$4 sm:$0xff]   ;;  %v2147_v47 = vld [vmem:[#allocation3 + $0x70] ss:$8 sps:$4 sm:$0xff]   ;;  %v2149_v49 = vld [vmem:[#allocation3 + $0x84] ss:$8 sps:$4 sm:$0xff]  }
  0x2d   :  { %v2145_v46 = vld [vmem:[#allocation3 + $0x174] ss:$8 sps:$4 sm:$0xff]   ;;  %v2148_v48 = vld [vmem:[#allocation3 + $0x170] ss:$8 sps:$4 sm:$0xff]   ;;  %v2151_v50 = vld [vmem:[#allocation3 + $0x184] ss:$8 sps:$4 sm:$0xff]  }
  0x2e   :  { %v2153_v51 = vld [vmem:[#allocation3 + $0x80] ss:$8 sps:$4 sm:$0xff]   ;;  %v2155_v53 = vld [vmem:[#allocation3 + $0x94] ss:$8 sps:$4 sm:$0xff]   ;;  %v2159_v55 = vld [vmem:[#allocation3 + $0x90] ss:$8 sps:$4 sm:$0xff]  }
  0x2f   :  { %697 = vmatpush1.bf16.msra.mxu0 %v2089_v5  ;;  %2065 = vmatpush1.bf16.msra.mxu1 %v2089_v5  ;;  %v2154_v52 = vld [vmem:[#allocation3 + $0x180] ss:$8 sps:$4 sm:$0xff]   ;;  %v2157_v54 = vld [vmem:[#allocation3 + $0x194] ss:$8 sps:$4 sm:$0xff]   ;;  %v2160_v56 = vld [vmem:[#allocation3 + $0x190] ss:$8 sps:$4 sm:$0xff]  }
  0x30   :  { %698 = vmatprep.subr.bf16.mxu0 %v2269_v0  ;;  %2050 = vmatprep.subr.bf16.mxu1 %v2269_v0  ;;  %v2161_v57 = vld [vmem:[#allocation3 + $0xa4] ss:$8 sps:$4 sm:$0xff]   ;;  %v2165_v59 = vld [vmem:[#allocation3 + $0xa0] ss:$8 sps:$4 sm:$0xff]   ;;  %v2167_v61 = vld [vmem:[#allocation3 + $0xb4] ss:$8 sps:$4 sm:$0xff]  }
  0x31   :  { %v2163_v58 = vld [vmem:[#allocation3 + $0x1a4] ss:$8 sps:$4 sm:$0xff]   ;;  %v2166_v60 = vld [vmem:[#allocation3 + $0x1a0] ss:$8 sps:$4 sm:$0xff]   ;;  %v2169_v62 = vld [vmem:[#allocation3 + $0x1b4] ss:$8 sps:$4 sm:$0xff]  }
  0x32   :  { %v2171_v63 = vld [vmem:[#allocation3 + $0xb0] ss:$8 sps:$4 sm:$0xff]   ;;  %v2173_v1 = vld [vmem:[#allocation3 + $0xc4] ss:$8 sps:$4 sm:$0xff]   ;;  %v2177_v3 = vld [vmem:[#allocation3 + $0xc0] ss:$8 sps:$4 sm:$0xff]  }
  0x33   :  { %699 = vmatpush1.bf16.msra.mxu0 %v2090_v7  ;;  %2066 = vmatpush1.bf16.msra.mxu1 %v2090_v7  ;;  %v2175_v2 = vld [vmem:[#allocation3 + $0x1c4] ss:$8 sps:$4 sm:$0xff]   ;;  %v2178_v4 = vld [vmem:[#allocation3 + $0x1c0] ss:$8 sps:$4 sm:$0xff]   ;;  %v2179_v5 = vld [vmem:[#allocation3 + $0xd4] ss:$8 sps:$4 sm:$0xff]  }
  0x34   :  { %700 = vmatprep.subr.bf16.mxu0 %v2269_v0  ;;  %2051 = vmatprep.subr.bf16.mxu1 %v2269_v0  ;;  %v2181_v6 = vld [vmem:[#allocation3 + $0x1d4] ss:$8 sps:$4 sm:$0xff]   ;;  %v2183_v7 = vld [vmem:[#allocation3 + $0xd0] ss:$8 sps:$4 sm:$0xff]  }
  0x35   :  { %v2184_v8 = vld [vmem:[#allocation3 + $0x1d0] ss:$8 sps:$4 sm:$0xff]  }
  0x37   :  { %701 = vmatpush1.bf16.msra.mxu0 %v2091_v9  ;;  %2067 = vmatpush1.bf16.msra.mxu1 %v2091_v9  ;;  %v2185_v9 = vld [vmem:[#allocation3 + $0xe4] ss:$8 sps:$4 sm:$0xff]  }
  0x38   :  { %702 = vmatprep.subr.bf16.mxu0 %v2269_v0  ;;  %2052 = vmatprep.subr.bf16.mxu1 %v2269_v0 }
  0x3b   :  { %703 = vmatpush1.bf16.msra.mxu0 %v2092_v10  ;;  %2068 = vmatpush1.bf16.msra.mxu1 %v2092_v10  ;;  %v2187_v10 = vld [vmem:[#allocation3 + $0x1e4] ss:$8 sps:$4 sm:$0xff]  }
  0x3c   :  { %704 = vmatprep.subr.bf16.mxu0 %v2269_v0  ;;  %2053 = vmatprep.subr.bf16.mxu1 %v2269_v0 }
  0x3f   :  { %705 = vmatpush2.bf16.msra.mxu0 %v2093_v11  ;;  %2069 = vmatpush2.bf16.msra.mxu1 %v2093_v11  ;;  %v2189_v11 = vld [vmem:[#allocation3 + $0xe0] ss:$8 sps:$4 sm:$0xff]  }
  0x40   :  { %706 = vmatprep.subr.bf16.mxu0 %v2269_v0  ;;  %2054 = vmatprep.subr.bf16.mxu1 %v2269_v0 }
  0x43   :  { %707 = vmatpush2.bf16.msra.mxu0 %v2094_v12  ;;  %2070 = vmatpush2.bf16.msra.mxu1 %v2094_v12  ;;  %v2190_v12 = vld [vmem:[#allocation3 + $0x1e0] ss:$8 sps:$4 sm:$0xff]  }
  0x44   :  { %708 = vmatprep.subr.bf16.mxu0 %v2269_v0  ;;  %2055 = vmatprep.subr.bf16.mxu1 %v2269_v0 }
  0x47   :  { %709 = vmatpush2.bf16.msra.mxu0 %v2095_v13  ;;  %2071 = vmatpush2.bf16.msra.mxu1 %v2095_v13  ;;  %v2191_v13 = vld [vmem:[#allocation3 + $0xf4] ss:$8 sps:$4 sm:$0xff]  }
  0x48   :  { %710 = vmatprep.subr.bf16.mxu0 %v2269_v0  ;;  %2056 = vmatprep.subr.bf16.mxu1 %v2269_v0 }
  0x4b   :  { %711 = vmatpush2.bf16.msra.mxu0 %v2096_v14  ;;  %2072 = vmatpush2.bf16.msra.mxu1 %v2096_v14  ;;  %v2193_v14 = vld [vmem:[#allocation3 + $0x1f4] ss:$8 sps:$4 sm:$0xff]  }
  0x4c   :  { %712 = vmatprep.subr.bf16.mxu0 %v2269_v0  ;;  %2057 = vmatprep.subr.bf16.mxu1 %v2269_v0 }
  0x4f   :  { %713 = vmatpush2.bf16.msra.mxu0 %v2097_v15  ;;  %2073 = vmatpush2.bf16.msra.mxu1 %v2097_v15  ;;  %v2195_v15 = vld [vmem:[#allocation3 + $0xf0] ss:$8 sps:$4 sm:$0xff]  }
  0x50   :  { %714 = vmatprep.subr.bf16.mxu0 %v2269_v0  ;;  %2058 = vmatprep.subr.bf16.mxu1 %v2269_v0 }
  0x53   :  { %715 = vmatpush2.bf16.msra.mxu0 %v2098_v16  ;;  %2074 = vmatpush2.bf16.msra.mxu1 %v2098_v16  ;;  %v2196_v16 = vld [vmem:[#allocation3 + $0x1f0] ss:$8 sps:$4 sm:$0xff]  }
  0x54   :  { %716 = vmatprep.subr.bf16.mxu0 %v2269_v0  ;;  %2059 = vmatprep.subr.bf16.mxu1 %v2269_v0 }
  0x57   :  { %717 = vmatpush2.bf16.msra.mxu0 %v2099_v17  ;;  %2075 = vmatpush2.bf16.msra.mxu1 %v2099_v17 }
  0x58   :  { %718 = vmatprep.subr.bf16.mxu0 %v2269_v0  ;;  %2060 = vmatprep.subr.bf16.mxu1 %v2269_v0  ;;  %v2172_v0 = vld [vmem:[#allocation3 + $0x1b0] ss:$8 sps:$4 sm:$0xff]  }
  0x5b   :  { %719 = vmatpush2.bf16.msra.mxu0 %v2100_v18  ;;  %2076 = vmatpush2.bf16.msra.mxu1 %v2100_v18  ;;  %v2335_v18 = vld [vmem:[%s2409_s2] ss:$0 sm:$0xff]  ;;  %s2270_s2 = smov [#allocation8]  }
  0x5c   :  { %s1632_s26 = sshll.u32 %s2270_s2, 4  ;;  %s1633_s26 = int_to_ptr.vmem [resolvable:$true] %s1632_s26 }
  0x5d   :  { %s2237_s27 = scalar_lea.vmem %s1633_s26, 4096  ;;  %p2242_p11 = scmp.lt.s32.totalorder %s1633_s26, %s1633_s26 }
  0x5e   :  { %721 = vmatmul.mubr.bf16.vlgmr.msra.gmra.mxu0 %v2101_v19  ;;  %849 = vmatmul.mubr.bf16.vlgmr.msra.gmra.mxu1 %v2104_v20  ;;  %p2238_p10 = scmp.ne.s32.totalorder %s1633_s26, %s2237_s27  ;;  %p2243_p12 = scmp.lt.s32.totalorder %s2237_s27, %s2237_s27 }
  0x5f   :  { %728 = vmatprep.mubr.bf16.mxu0 %v2107_v21  ;;  %856 = vmatprep.mubr.bf16.mxu1 %v2109_v22 }
  0x60   :  { %p2244_p13 = por %p2243_p12, %p2242_p11 }
  0x62   :  { %p2245_p0 = pnand %p2244_p13, %p2238_p10 }
  0x66   :  { %729 = vmatmul.mubr.bf16.gmra.mxu0 %v2111_v23  ;;  %857 = vmatmul.mubr.bf16.gmra.mxu1 %v2112_v24 }
  0x67   :  { %736 = vmatprep.mubr.bf16.mxu0 %v2113_v25  ;;  %864 = vmatprep.mubr.bf16.mxu1 %v2115_v26 }
  0x6e   :  { %737 = vmatmul.mubr.bf16.gmra.mxu0 %v2117_v27  ;;  %865 = vmatmul.mubr.bf16.gmra.mxu1 %v2118_v28 }
  0x6f   :  { %744 = vmatprep.mubr.bf16.mxu0 %v2119_v29  ;;  %872 = vmatprep.mubr.bf16.mxu1 %v2121_v30 }
  0x76   :  { %745 = vmatmul.mubr.bf16.gmra.mxu0 %v2123_v31  ;;  %873 = vmatmul.mubr.bf16.gmra.mxu1 %v2124_v32 }
  0x77   :  { %752 = vmatprep.mubr.bf16.mxu0 %v2125_v33  ;;  %880 = vmatprep.mubr.bf16.mxu1 %v2127_v34 }
  0x7e   :  { %753 = vmatmul.mubr.bf16.gmra.mxu0 %v2129_v35  ;;  %881 = vmatmul.mubr.bf16.gmra.mxu1 %v2130_v36 }
  0x7f   :  { %760 = vmatprep.mubr.bf16.mxu0 %v2131_v37  ;;  %888 = vmatprep.mubr.bf16.mxu1 %v2133_v38 }
  0x86   :  { %761 = vmatmul.mubr.bf16.gmra.mxu0 %v2135_v39  ;;  %889 = vmatmul.mubr.bf16.gmra.mxu1 %v2136_v40 }
  0x87   :  { %768 = vmatprep.mubr.bf16.mxu0 %v2137_v41  ;;  %896 = vmatprep.mubr.bf16.mxu1 %v2139_v42 }
  0x8e   :  { %769 = vmatmul.mubr.bf16.gmra.mxu0 %v2141_v43  ;;  %897 = vmatmul.mubr.bf16.gmra.mxu1 %v2142_v44 }
  0x8f   :  { %776 = vmatprep.mubr.bf16.mxu0 %v2143_v45  ;;  %904 = vmatprep.mubr.bf16.mxu1 %v2145_v46 }
  0x96   :  { %777 = vmatmul.mubr.bf16.gmra.mxu0 %v2147_v47  ;;  %905 = vmatmul.mubr.bf16.gmra.mxu1 %v2148_v48 }
  0x97   :  { %784 = vmatprep.mubr.bf16.mxu0 %v2149_v49  ;;  %912 = vmatprep.mubr.bf16.mxu1 %v2151_v50 }
  0x9e   :  { %785 = vmatmul.mubr.bf16.gmra.mxu0 %v2153_v51  ;;  %913 = vmatmul.mubr.bf16.gmra.mxu1 %v2154_v52 }
  0x9f   :  { %792 = vmatprep.mubr.bf16.mxu0 %v2155_v53  ;;  %920 = vmatprep.mubr.bf16.mxu1 %v2157_v54 }
  0xa6   :  { %793 = vmatmul.mubr.bf16.gmra.mxu0 %v2159_v55  ;;  %921 = vmatmul.mubr.bf16.gmra.mxu1 %v2160_v56 }
  0xa7   :  { %800 = vmatprep.mubr.bf16.mxu0 %v2161_v57  ;;  %928 = vmatprep.mubr.bf16.mxu1 %v2163_v58 }
  0xae   :  { %801 = vmatmul.mubr.bf16.gmra.mxu0 %v2165_v59  ;;  %929 = vmatmul.mubr.bf16.gmra.mxu1 %v2166_v60 }
  0xaf   :  { %808 = vmatprep.mubr.bf16.mxu0 %v2167_v61  ;;  %936 = vmatprep.mubr.bf16.mxu1 %v2169_v62 }
  0xb6   :  { %809 = vmatmul.mubr.bf16.gmra.mxu0 %v2171_v63  ;;  %937 = vmatmul.mubr.bf16.gmra.mxu1 %v2172_v0 }
  0xb7   :  { %816 = vmatprep.mubr.bf16.mxu0 %v2173_v1  ;;  %944 = vmatprep.mubr.bf16.mxu1 %v2175_v2 }
  0xbe   :  { %817 = vmatmul.mubr.bf16.gmra.mxu0 %v2177_v3  ;;  %945 = vmatmul.mubr.bf16.gmra.mxu1 %v2178_v4 }
  0xbf   :  { %824 = vmatprep.mubr.bf16.mxu0 %v2179_v5  ;;  %952 = vmatprep.mubr.bf16.mxu1 %v2181_v6 }
  0xc6   :  { %825 = vmatmul.mubr.bf16.gmra.mxu0 %v2183_v7  ;;  %953 = vmatmul.mubr.bf16.gmra.mxu1 %v2184_v8 }
  0xc7   :  { %832 = vmatprep.mubr.bf16.mxu0 %v2185_v9  ;;  %960 = vmatprep.mubr.bf16.mxu1 %v2187_v10 }
  0xce   :  { %833 = vmatmul.mubr.bf16.gmra.mxu0 %v2189_v11  ;;  %961 = vmatmul.mubr.bf16.gmra.mxu1 %v2190_v12 }
  0xcf   :  { %840 = vmatprep.mubr.bf16.mxu0 %v2191_v13  ;;  %968 = vmatprep.mubr.bf16.mxu1 %v2193_v14 }
  0xd6   :  { %841 = vmatmul.mubr.bf16.gmra.mxu0 %v2195_v15  ;;  %969 = vmatmul.mubr.bf16.gmra.mxu1 %v2196_v16 }
 0x11e   :  { %v722_v17 = vpop.f32.mrf.mxu0  ;;  %v850_v19 = vpop.f32.mrf.mxu1 }
 0x11f   :  { %v1179_v22 = vadd.f32 %v2335_v18, %v722_v17  ;;  %v1211_v23 = vadd.f32 %v2335_v18, %v850_v19 }
 0x120   :  { %v724_v20 = vpop.f32.mrf.mxu0  ;;  %v852_v21 = vpop.f32.mrf.mxu1 }
 0x121   :  { %v1243_v30 = vmax.f32 %v1179_v22, 0.0  ;;  %v1275_v31 = vmax.f32 %v1211_v23, 0.0 }
 0x122   :  { %v725_v24 = vpop.f32.mrf.mxu0  ;;  %v853_v25 = vpop.f32.mrf.mxu1 }
 0x123   :  { %v1180_v26 = vadd.f32 %v2335_v18, %v725_v24  ;;  %v1212_v27 = vadd.f32 %v2335_v18, %v853_v25 }
 0x124   :  { %v727_v28 = vpop.f32.mrf.mxu0  ;;  %v855_v29 = vpop.f32.mrf.mxu1 }
 0x125   :  { %v1244_v32 = vmax.f32 %v1180_v26, 0.0  ;;  %v1276_v33 = vmax.f32 %v1212_v27, 0.0 }
 0x126   :  { %v730_v34 = vpop.f32.mrf.mxu0  ;;  %v858_v35 = vpop.f32.mrf.mxu1 }
 0x127   :  { %v1857_v36 = vpack.c.bf16 %v1244_v32, %v1243_v30  ;;  %v1937_v37 = vpack.c.bf16 %v1276_v33, %v1275_v31  ;;  %v1181_v40 = vadd.f32 %v2335_v18, %v730_v34  ;;  %v1213_v41 = vadd.f32 %v2335_v18, %v858_v35 }
 0x128   :  { %v732_v38 = vpop.f32.mrf.mxu0  ;;  %v860_v39 = vpop.f32.mrf.mxu1 }
 0x129   :  { %1858 = vst [vmem:[#allocation8] sm:$0xff] %v1857_v36   ;;  %2029 = vst [vmem:[#allocation8 + $0x80] sm:$0xff] %v1937_v37   ;;  %v1245_v48 = vmax.f32 %v1181_v40, 0.0  ;;  %v1277_v49 = vmax.f32 %v1213_v41, 0.0 }
 0x12a   :  { %v733_v42 = vpop.f32.mrf.mxu0  ;;  %v861_v43 = vpop.f32.mrf.mxu1 }
 0x12b   :  { %v1182_v44 = vadd.f32 %v2335_v18, %v733_v42  ;;  %v1214_v45 = vadd.f32 %v2335_v18, %v861_v43 }
 0x12c   :  { %v735_v46 = vpop.f32.mrf.mxu0  ;;  %v863_v47 = vpop.f32.mrf.mxu1 }
 0x12d   :  { %v1246_v50 = vmax.f32 %v1182_v44, 0.0  ;;  %v1278_v51 = vmax.f32 %v1214_v45, 0.0 }
 0x12e   :  { %v738_v52 = vpop.f32.mrf.mxu0  ;;  %v866_v53 = vpop.f32.mrf.mxu1 }
 0x12f   :  { %v1862_v54 = vpack.c.bf16 %v1246_v50, %v1245_v48  ;;  %v1942_v55 = vpack.c.bf16 %v1278_v51, %v1277_v49  ;;  %v1183_v58 = vadd.f32 %v2335_v18, %v738_v52  ;;  %v1215_v59 = vadd.f32 %v2335_v18, %v866_v53 }
 0x130   :  { %v740_v56 = vpop.f32.mrf.mxu0  ;;  %v868_v57 = vpop.f32.mrf.mxu1 }
 0x131   :  { %2014 = vst [vmem:[#allocation8 + $0x8] sm:$0xff] %v1862_v54   ;;  %2030 = vst [vmem:[#allocation8 + $0x88] sm:$0xff] %v1942_v55   ;;  %v1247_v2 = vmax.f32 %v1183_v58, 0.0  ;;  %v1279_v3 = vmax.f32 %v1215_v59, 0.0 }
 0x132   :  { %v741_v60 = vpop.f32.mrf.mxu0  ;;  %v869_v61 = vpop.f32.mrf.mxu1 }
 0x133   :  { %v1184_v62 = vadd.f32 %v2335_v18, %v741_v60  ;;  %v1216_v63 = vadd.f32 %v2335_v18, %v869_v61 }
 0x134   :  { %v743_v0 = vpop.f32.mrf.mxu0  ;;  %v871_v1 = vpop.f32.mrf.mxu1 }
 0x135   :  { %v1248_v4 = vmax.f32 %v1184_v62, 0.0  ;;  %v1280_v5 = vmax.f32 %v1216_v63, 0.0 }
 0x136   :  { %v746_v6 = vpop.f32.mrf.mxu0  ;;  %v874_v7 = vpop.f32.mrf.mxu1 }
 0x137   :  { %v1867_v8 = vpack.c.bf16 %v1248_v4, %v1247_v2  ;;  %v1947_v9 = vpack.c.bf16 %v1280_v5, %v1279_v3  ;;  %v1185_v12 = vadd.f32 %v2335_v18, %v746_v6  ;;  %v1217_v13 = vadd.f32 %v2335_v18, %v874_v7 }
 0x138   :  { %v748_v10 = vpop.f32.mrf.mxu0  ;;  %v876_v11 = vpop.f32.mrf.mxu1 }
 0x139   :  { %2015 = vst [vmem:[#allocation8 + $0x10] sm:$0xff] %v1867_v8   ;;  %2031 = vst [vmem:[#allocation8 + $0x90] sm:$0xff] %v1947_v9   ;;  %v1249_v21 = vmax.f32 %v1185_v12, 0.0  ;;  %v1281_v22 = vmax.f32 %v1217_v13, 0.0 }
 0x13a   :  { %v749_v14 = vpop.f32.mrf.mxu0  ;;  %v877_v15 = vpop.f32.mrf.mxu1 }
 0x13b   :  { %v1186_v16 = vadd.f32 %v2335_v18, %v749_v14  ;;  %v1218_v17 = vadd.f32 %v2335_v18, %v877_v15 }
 0x13c   :  { %v751_v19 = vpop.f32.mrf.mxu0  ;;  %v879_v20 = vpop.f32.mrf.mxu1 }
 0x13d   :  { %v1250_v23 = vmax.f32 %v1186_v16, 0.0  ;;  %v1282_v24 = vmax.f32 %v1218_v17, 0.0 }
 0x13e   :  { %v754_v25 = vpop.f32.mrf.mxu0  ;;  %v882_v26 = vpop.f32.mrf.mxu1 }
 0x13f   :  { %v1872_v27 = vpack.c.bf16 %v1250_v23, %v1249_v21  ;;  %v1952_v28 = vpack.c.bf16 %v1282_v24, %v1281_v22  ;;  %v1187_v31 = vadd.f32 %v2335_v18, %v754_v25  ;;  %v1219_v32 = vadd.f32 %v2335_v18, %v882_v26 }
 0x140   :  { %v756_v29 = vpop.f32.mrf.mxu0  ;;  %v884_v30 = vpop.f32.mrf.mxu1 }
 0x141   :  { %2016 = vst [vmem:[#allocation8 + $0x18] sm:$0xff] %v1872_v27   ;;  %2032 = vst [vmem:[#allocation8 + $0x98] sm:$0xff] %v1952_v28   ;;  %v1251_v39 = vmax.f32 %v1187_v31, 0.0  ;;  %v1283_v40 = vmax.f32 %v1219_v32, 0.0 }
 0x142   :  { %v757_v33 = vpop.f32.mrf.mxu0  ;;  %v885_v34 = vpop.f32.mrf.mxu1 }
 0x143   :  { %v1188_v35 = vadd.f32 %v2335_v18, %v757_v33  ;;  %v1220_v36 = vadd.f32 %v2335_v18, %v885_v34 }
 0x144   :  { %v759_v37 = vpop.f32.mrf.mxu0  ;;  %v887_v38 = vpop.f32.mrf.mxu1 }
 0x145   :  { %v1252_v41 = vmax.f32 %v1188_v35, 0.0  ;;  %v1284_v42 = vmax.f32 %v1220_v36, 0.0 }
 0x146   :  { %v762_v43 = vpop.f32.mrf.mxu0  ;;  %v890_v44 = vpop.f32.mrf.mxu1 }
 0x147   :  { %v1877_v45 = vpack.c.bf16 %v1252_v41, %v1251_v39  ;;  %v1957_v46 = vpack.c.bf16 %v1284_v42, %v1283_v40  ;;  %v1189_v49 = vadd.f32 %v2335_v18, %v762_v43  ;;  %v1221_v50 = vadd.f32 %v2335_v18, %v890_v44 }
 0x148   :  { %v764_v47 = vpop.f32.mrf.mxu0  ;;  %v892_v48 = vpop.f32.mrf.mxu1 }
 0x149   :  { %2017 = vst [vmem:[#allocation8 + $0x20] sm:$0xff] %v1877_v45   ;;  %2033 = vst [vmem:[#allocation8 + $0xa0] sm:$0xff] %v1957_v46   ;;  %v1253_v57 = vmax.f32 %v1189_v49, 0.0  ;;  %v1285_v58 = vmax.f32 %v1221_v50, 0.0 }
 0x14a   :  { %v765_v51 = vpop.f32.mrf.mxu0  ;;  %v893_v52 = vpop.f32.mrf.mxu1 }
 0x14b   :  { %v1190_v53 = vadd.f32 %v2335_v18, %v765_v51  ;;  %v1222_v54 = vadd.f32 %v2335_v18, %v893_v52 }
 0x14c   :  { %v767_v55 = vpop.f32.mrf.mxu0  ;;  %v895_v56 = vpop.f32.mrf.mxu1 }
 0x14d   :  { %v1254_v59 = vmax.f32 %v1190_v53, 0.0  ;;  %v1286_v60 = vmax.f32 %v1222_v54, 0.0 }
 0x14e   :  { %v770_v61 = vpop.f32.mrf.mxu0  ;;  %v898_v62 = vpop.f32.mrf.mxu1 }
 0x14f   :  { %v1882_v63 = vpack.c.bf16 %v1254_v59, %v1253_v57  ;;  %v1962_v0 = vpack.c.bf16 %v1286_v60, %v1285_v58  ;;  %v1191_v3 = vadd.f32 %v2335_v18, %v770_v61  ;;  %v1223_v4 = vadd.f32 %v2335_v18, %v898_v62 }
 0x150   :  { %v772_v1 = vpop.f32.mrf.mxu0  ;;  %v900_v2 = vpop.f32.mrf.mxu1 }
 0x151   :  { %2018 = vst [vmem:[#allocation8 + $0x28] sm:$0xff] %v1882_v63   ;;  %2034 = vst [vmem:[#allocation8 + $0xa8] sm:$0xff] %v1962_v0   ;;  %v1255_v11 = vmax.f32 %v1191_v3, 0.0  ;;  %v1287_v12 = vmax.f32 %v1223_v4, 0.0 }
 0x152   :  { %v773_v5 = vpop.f32.mrf.mxu0  ;;  %v901_v6 = vpop.f32.mrf.mxu1 }
 0x153   :  { %v1192_v7 = vadd.f32 %v2335_v18, %v773_v5  ;;  %v1224_v8 = vadd.f32 %v2335_v18, %v901_v6 }
 0x154   :  { %v775_v9 = vpop.f32.mrf.mxu0  ;;  %v903_v10 = vpop.f32.mrf.mxu1 }
 0x155   :  { %v1256_v13 = vmax.f32 %v1192_v7, 0.0  ;;  %v1288_v14 = vmax.f32 %v1224_v8, 0.0 }
 0x156   :  { %v778_v15 = vpop.f32.mrf.mxu0  ;;  %v906_v16 = vpop.f32.mrf.mxu1 }
 0x157   :  { %v1887_v17 = vpack.c.bf16 %v1256_v13, %v1255_v11  ;;  %v1967_v19 = vpack.c.bf16 %v1288_v14, %v1287_v12  ;;  %v1193_v22 = vadd.f32 %v2335_v18, %v778_v15  ;;  %v1225_v23 = vadd.f32 %v2335_v18, %v906_v16 }
 0x158   :  { %v780_v20 = vpop.f32.mrf.mxu0  ;;  %v908_v21 = vpop.f32.mrf.mxu1 }
 0x159   :  { %2019 = vst [vmem:[#allocation8 + $0x30] sm:$0xff] %v1887_v17   ;;  %2035 = vst [vmem:[#allocation8 + $0xb0] sm:$0xff] %v1967_v19   ;;  %v1257_v30 = vmax.f32 %v1193_v22, 0.0  ;;  %v1289_v31 = vmax.f32 %v1225_v23, 0.0 }
 0x15a   :  { %v781_v24 = vpop.f32.mrf.mxu0  ;;  %v909_v25 = vpop.f32.mrf.mxu1 }
 0x15b   :  { %v1194_v26 = vadd.f32 %v2335_v18, %v781_v24  ;;  %v1226_v27 = vadd.f32 %v2335_v18, %v909_v25 }
 0x15c   :  { %v783_v28 = vpop.f32.mrf.mxu0  ;;  %v911_v29 = vpop.f32.mrf.mxu1 }
 0x15d   :  { %v1258_v32 = vmax.f32 %v1194_v26, 0.0  ;;  %v1290_v33 = vmax.f32 %v1226_v27, 0.0 }
 0x15e   :  { %v786_v34 = vpop.f32.mrf.mxu0  ;;  %v914_v35 = vpop.f32.mrf.mxu1 }
 0x15f   :  { %v1892_v36 = vpack.c.bf16 %v1258_v32, %v1257_v30  ;;  %v1972_v37 = vpack.c.bf16 %v1290_v33, %v1289_v31  ;;  %v1195_v40 = vadd.f32 %v2335_v18, %v786_v34  ;;  %v1227_v41 = vadd.f32 %v2335_v18, %v914_v35 }
 0x160   :  { %v788_v38 = vpop.f32.mrf.mxu0  ;;  %v916_v39 = vpop.f32.mrf.mxu1 }
 0x161   :  { %2020 = vst [vmem:[#allocation8 + $0x38] sm:$0xff] %v1892_v36   ;;  %2036 = vst [vmem:[#allocation8 + $0xb8] sm:$0xff] %v1972_v37   ;;  %v1259_v48 = vmax.f32 %v1195_v40, 0.0  ;;  %v1291_v49 = vmax.f32 %v1227_v41, 0.0 }
 0x162   :  { %v789_v42 = vpop.f32.mrf.mxu0  ;;  %v917_v43 = vpop.f32.mrf.mxu1 }
 0x163   :  { %v1196_v44 = vadd.f32 %v2335_v18, %v789_v42  ;;  %v1228_v45 = vadd.f32 %v2335_v18, %v917_v43 }
 0x164   :  { %v791_v46 = vpop.f32.mrf.mxu0  ;;  %v919_v47 = vpop.f32.mrf.mxu1 }
 0x165   :  { %v1260_v50 = vmax.f32 %v1196_v44, 0.0  ;;  %v1292_v51 = vmax.f32 %v1228_v45, 0.0 }
 0x166   :  { %v794_v52 = vpop.f32.mrf.mxu0  ;;  %v922_v53 = vpop.f32.mrf.mxu1 }
 0x167   :  { %v1897_v54 = vpack.c.bf16 %v1260_v50, %v1259_v48  ;;  %v1977_v55 = vpack.c.bf16 %v1292_v51, %v1291_v49  ;;  %v1197_v58 = vadd.f32 %v2335_v18, %v794_v52  ;;  %v1229_v59 = vadd.f32 %v2335_v18, %v922_v53 }
 0x168   :  { %v796_v56 = vpop.f32.mrf.mxu0  ;;  %v924_v57 = vpop.f32.mrf.mxu1 }
 0x169   :  { %2021 = vst [vmem:[#allocation8 + $0x40] sm:$0xff] %v1897_v54   ;;  %2037 = vst [vmem:[#allocation8 + $0xc0] sm:$0xff] %v1977_v55   ;;  %v1261_v2 = vmax.f32 %v1197_v58, 0.0  ;;  %v1293_v3 = vmax.f32 %v1229_v59, 0.0 }
 0x16a   :  { %v797_v60 = vpop.f32.mrf.mxu0  ;;  %v925_v61 = vpop.f32.mrf.mxu1 }
 0x16b   :  { %v1198_v62 = vadd.f32 %v2335_v18, %v797_v60  ;;  %v1230_v63 = vadd.f32 %v2335_v18, %v925_v61 }
 0x16c   :  { %v799_v0 = vpop.f32.mrf.mxu0  ;;  %v927_v1 = vpop.f32.mrf.mxu1 }
 0x16d   :  { %v1262_v4 = vmax.f32 %v1198_v62, 0.0  ;;  %v1294_v5 = vmax.f32 %v1230_v63, 0.0 }
 0x16e   :  { %v802_v6 = vpop.f32.mrf.mxu0  ;;  %v930_v7 = vpop.f32.mrf.mxu1 }
 0x16f   :  { %v1902_v8 = vpack.c.bf16 %v1262_v4, %v1261_v2  ;;  %v1982_v9 = vpack.c.bf16 %v1294_v5, %v1293_v3  ;;  %v1199_v12 = vadd.f32 %v2335_v18, %v802_v6  ;;  %v1231_v13 = vadd.f32 %v2335_v18, %v930_v7 }
 0x170   :  { %v804_v10 = vpop.f32.mrf.mxu0  ;;  %v932_v11 = vpop.f32.mrf.mxu1 }
 0x171   :  { %2022 = vst [vmem:[#allocation8 + $0x48] sm:$0xff] %v1902_v8   ;;  %2038 = vst [vmem:[#allocation8 + $0xc8] sm:$0xff] %v1982_v9   ;;  %v1263_v21 = vmax.f32 %v1199_v12, 0.0  ;;  %v1295_v22 = vmax.f32 %v1231_v13, 0.0 }
 0x172   :  { %v805_v14 = vpop.f32.mrf.mxu0  ;;  %v933_v15 = vpop.f32.mrf.mxu1 }
 0x173   :  { %v1200_v16 = vadd.f32 %v2335_v18, %v805_v14  ;;  %v1232_v17 = vadd.f32 %v2335_v18, %v933_v15 }
 0x174   :  { %v807_v19 = vpop.f32.mrf.mxu0  ;;  %v935_v20 = vpop.f32.mrf.mxu1 }
 0x175   :  { %v1264_v23 = vmax.f32 %v1200_v16, 0.0  ;;  %v1296_v24 = vmax.f32 %v1232_v17, 0.0 }
 0x176   :  { %v810_v25 = vpop.f32.mrf.mxu0  ;;  %v938_v26 = vpop.f32.mrf.mxu1 }
 0x177   :  { %v1907_v27 = vpack.c.bf16 %v1264_v23, %v1263_v21  ;;  %v1987_v28 = vpack.c.bf16 %v1296_v24, %v1295_v22  ;;  %v1201_v31 = vadd.f32 %v2335_v18, %v810_v25  ;;  %v1233_v32 = vadd.f32 %v2335_v18, %v938_v26 }
 0x178   :  { %v812_v29 = vpop.f32.mrf.mxu0  ;;  %v940_v30 = vpop.f32.mrf.mxu1 }
 0x179   :  { %2023 = vst [vmem:[#allocation8 + $0x50] sm:$0xff] %v1907_v27   ;;  %2039 = vst [vmem:[#allocation8 + $0xd0] sm:$0xff] %v1987_v28   ;;  %v1265_v39 = vmax.f32 %v1201_v31, 0.0  ;;  %v1297_v40 = vmax.f32 %v1233_v32, 0.0 }
 0x17a   :  { %v813_v33 = vpop.f32.mrf.mxu0  ;;  %v941_v34 = vpop.f32.mrf.mxu1 }
 0x17b   :  { %v1202_v35 = vadd.f32 %v2335_v18, %v813_v33  ;;  %v1234_v36 = vadd.f32 %v2335_v18, %v941_v34 }
 0x17c   :  { %v815_v37 = vpop.f32.mrf.mxu0  ;;  %v943_v38 = vpop.f32.mrf.mxu1 }
 0x17d   :  { %v1266_v41 = vmax.f32 %v1202_v35, 0.0  ;;  %v1298_v42 = vmax.f32 %v1234_v36, 0.0 }
 0x17e   :  { %v818_v43 = vpop.f32.mrf.mxu0  ;;  %v946_v44 = vpop.f32.mrf.mxu1 }
 0x17f   :  { %v1912_v45 = vpack.c.bf16 %v1266_v41, %v1265_v39  ;;  %v1992_v46 = vpack.c.bf16 %v1298_v42, %v1297_v40  ;;  %v1203_v49 = vadd.f32 %v2335_v18, %v818_v43  ;;  %v1235_v50 = vadd.f32 %v2335_v18, %v946_v44 }
 0x180   :  { %v820_v47 = vpop.f32.mrf.mxu0  ;;  %v948_v48 = vpop.f32.mrf.mxu1 }
 0x181   :  { %2024 = vst [vmem:[#allocation8 + $0x58] sm:$0xff] %v1912_v45   ;;  %2040 = vst [vmem:[#allocation8 + $0xd8] sm:$0xff] %v1992_v46   ;;  %v1267_v57 = vmax.f32 %v1203_v49, 0.0  ;;  %v1299_v58 = vmax.f32 %v1235_v50, 0.0 }
 0x182   :  { %v821_v51 = vpop.f32.mrf.mxu0  ;;  %v949_v52 = vpop.f32.mrf.mxu1 }
 0x183   :  { %v1204_v53 = vadd.f32 %v2335_v18, %v821_v51  ;;  %v1236_v54 = vadd.f32 %v2335_v18, %v949_v52 }
 0x184   :  { %v823_v55 = vpop.f32.mrf.mxu0  ;;  %v951_v56 = vpop.f32.mrf.mxu1 }
 0x185   :  { %v1268_v59 = vmax.f32 %v1204_v53, 0.0  ;;  %v1300_v60 = vmax.f32 %v1236_v54, 0.0 }
 0x186   :  { %v826_v61 = vpop.f32.mrf.mxu0  ;;  %v954_v62 = vpop.f32.mrf.mxu1 }
 0x187   :  { %v1917_v63 = vpack.c.bf16 %v1268_v59, %v1267_v57  ;;  %v1997_v0 = vpack.c.bf16 %v1300_v60, %v1299_v58  ;;  %v1205_v3 = vadd.f32 %v2335_v18, %v826_v61  ;;  %v1237_v4 = vadd.f32 %v2335_v18, %v954_v62 }
 0x188   :  { %v828_v1 = vpop.f32.mrf.mxu0  ;;  %v956_v2 = vpop.f32.mrf.mxu1 }
 0x189   :  { %2025 = vst [vmem:[#allocation8 + $0x60] sm:$0xff] %v1917_v63   ;;  %2041 = vst [vmem:[#allocation8 + $0xe0] sm:$0xff] %v1997_v0   ;;  %v1269_v11 = vmax.f32 %v1205_v3, 0.0  ;;  %v1301_v12 = vmax.f32 %v1237_v4, 0.0 }
 0x18a   :  { %v829_v5 = vpop.f32.mrf.mxu0  ;;  %v957_v6 = vpop.f32.mrf.mxu1 }
 0x18b   :  { %v1206_v7 = vadd.f32 %v2335_v18, %v829_v5  ;;  %v1238_v8 = vadd.f32 %v2335_v18, %v957_v6 }
 0x18c   :  { %v831_v9 = vpop.f32.mrf.mxu0  ;;  %v959_v10 = vpop.f32.mrf.mxu1 }
 0x18d   :  { %v1270_v13 = vmax.f32 %v1206_v7, 0.0  ;;  %v1302_v14 = vmax.f32 %v1238_v8, 0.0 }
 0x18e   :  { %v834_v15 = vpop.f32.mrf.mxu0  ;;  %v962_v16 = vpop.f32.mrf.mxu1 }
 0x18f   :  { %v1922_v17 = vpack.c.bf16 %v1270_v13, %v1269_v11  ;;  %v2002_v19 = vpack.c.bf16 %v1302_v14, %v1301_v12  ;;  %v1207_v22 = vadd.f32 %v2335_v18, %v834_v15  ;;  %v1239_v23 = vadd.f32 %v2335_v18, %v962_v16 }
 0x190   :  { %v836_v20 = vpop.f32.mrf.mxu0  ;;  %v964_v21 = vpop.f32.mrf.mxu1 }
 0x191   :  { %2026 = vst [vmem:[#allocation8 + $0x68] sm:$0xff] %v1922_v17   ;;  %2042 = vst [vmem:[#allocation8 + $0xe8] sm:$0xff] %v2002_v19   ;;  %v1271_v30 = vmax.f32 %v1207_v22, 0.0  ;;  %v1303_v31 = vmax.f32 %v1239_v23, 0.0 }
 0x192   :  { %v837_v24 = vpop.f32.mrf.mxu0  ;;  %v965_v25 = vpop.f32.mrf.mxu1 }
 0x193   :  { %v1208_v26 = vadd.f32 %v2335_v18, %v837_v24  ;;  %v1240_v27 = vadd.f32 %v2335_v18, %v965_v25 }
 0x194   :  { %v839_v28 = vpop.f32.mrf.mxu0  ;;  %v967_v29 = vpop.f32.mrf.mxu1 }
 0x195   :  { %v1272_v32 = vmax.f32 %v1208_v26, 0.0  ;;  %v1304_v33 = vmax.f32 %v1240_v27, 0.0 }
 0x196   :  { %v842_v34 = vpop.f32.mrf.mxu0  ;;  %v970_v35 = vpop.f32.mrf.mxu1 }
 0x197   :  { %v1927_v36 = vpack.c.bf16 %v1272_v32, %v1271_v30  ;;  %v2007_v37 = vpack.c.bf16 %v1304_v33, %v1303_v31  ;;  %v1209_v40 = vadd.f32 %v2335_v18, %v842_v34  ;;  %v1241_v41 = vadd.f32 %v2335_v18, %v970_v35 }
 0x198   :  { %v844_v38 = vpop.f32.mrf.mxu0  ;;  %v972_v39 = vpop.f32.mrf.mxu1 }
 0x199   :  { %2027 = vst [vmem:[#allocation8 + $0x70] sm:$0xff] %v1927_v36   ;;  %2043 = vst [vmem:[#allocation8 + $0xf0] sm:$0xff] %v2007_v37   ;;  %v1273_v48 = vmax.f32 %v1209_v40, 0.0  ;;  %v1305_v49 = vmax.f32 %v1241_v41, 0.0 }
 0x19a   :  { %v845_v42 = vpop.f32.mrf.mxu0  ;;  %v973_v43 = vpop.f32.mrf.mxu1 }
 0x19b   :  { %v1210_v44 = vadd.f32 %v2335_v18, %v845_v42  ;;  %v1242_v45 = vadd.f32 %v2335_v18, %v973_v43 }
 0x19c   :  { %v847_v46 = vpop.f32.mrf.mxu0  ;;  %v975_v47 = vpop.f32.mrf.mxu1 }
 0x19d   :  { %v1274_v50 = vmax.f32 %v1210_v44, 0.0  ;;  %v1306_v51 = vmax.f32 %v1242_v45, 0.0 }
 0x19f   :  { %v1932_v52 = vpack.c.bf16 %v1274_v50, %v1273_v48  ;;  %v2012_v53 = vpack.c.bf16 %v1306_v51, %v1305_v49 }
 0x1a1   :  { %2028 = vst [vmem:[#allocation8 + $0x78] sm:$0xff] %v1932_v52   ;;  %2044 = vst [vmem:[#allocation8 + $0xf8] sm:$0xff] %v2012_v53  }
 0x1a2   :  { %2248 = shalt.err (!%p2245_p0)
}
 0x1a3   :  { %1638 = dma.vmem_to_hbm [thread:$0]  %s1633_s26, 4096, %s2410_s3, [#allocation5], %s2267_s22, %s2267_s22, %s2268_s23  }
 0x1a4   :  { %2261 = dma.done.wait [#allocation5], 4096  }
 0x1a5   :  { %2262 = vsyncadd [#allocation5], 4294963200 }
 0x1a6   :  { %1642 = vsyncpa [#allocation4], 1 }
 0x1a7   :  { %1643 = vsyncpa [#allocation7], 1 }
 0x1a8   :  { %1644 = vsyncpa [#allocation5], 1 }

</bundles_post_ra>
